<compile_context>
chip_gen: v5e
topology: v5e:2x2
jax: 0.10.0
libtpu: 0.0.40
codegen_flags: <defaults>
</compile_context>

<pallas_src>
import functools

import jax
import jax.numpy as jnp
import numpy as np
from jax.experimental import pallas as pl
from jax.experimental.pallas import tpu as pltpu


def _round_up(x, m):
    return ((x + m - 1) // m) * m


def _smt_kernel(rh_m2s_ref, rh_ref, y_in_ref, mask_ref,
                y_surf_ref, y_mant_ref, gain_ref, loss_ref,
                m2s_ref, s2m_ref, *, layer_factor, alpha_gain):
    y_surf = y_surf_ref[...]                                      # (B, 1)
    y_mant = y_mant_ref[...]                                      # (B, 1)

    # Per-batch column math (tiny; the only divides in the kernel are (B,1)).
    inv_nlayer = 1.0 / jnp.maximum(y_mant * layer_factor, 1.0)    # 1/clamp_min(n_layer,1)
    loss_term = loss_ref[...] / jnp.maximum(y_surf, y_mant)       # (B, 1)

    # k_swap_surf = sum_s k_swap_mant * y_in * inds_mant / y_surf  (per-batch
    # factors pulled out of the species sum; reduction goes to the XLU).
    weighted = rh_ref[...] * y_in_ref[...] * mask_ref[...]        # (B, S_pad)
    k_swap_surf = (jnp.sum(weighted, axis=-1, keepdims=True)
                   * inv_nlayer / y_surf)                         # (B, 1)
    s2m_val = gain_ref[...] * alpha_gain + k_swap_surf            # (B, 1)

    # mantle -> surface rates for this reaction tile (gathered k_swap_mant + loss term)
    m2s_ref[...] = rh_m2s_ref[...] * inv_nlayer + loss_term
    # surface -> mantle rate is batch-only; broadcast over the reaction tile
    # (== the rates_s2m.repeat(1, N) branch of the module)
    s2m_ref[...] = jnp.broadcast_to(s2m_val, s2m_ref.shape)


def surface_mantle_transition(rate_hopping, y_in, inds_mant, y_surf, y_mant,
                              dy_surf_gain, dy_surf_loss, inds_r_m2s,
                              *, layer_factor, num_active_layers, tile_n=1024):
    """Forward pass of SurfaceMantleTransition. Returns (B, 2*N) f32 rates."""
    alpha_gain = float(layer_factor) / float(num_active_layers)

    B, S = rate_hopping.shape
    N = int(inds_r_m2s.shape[0])
    f32 = jnp.float32

    rate_hopping = rate_hopping.astype(f32)
    y_in = y_in.astype(f32)
    mask = inds_mant.astype(f32).reshape(1, S)
    y_surf = y_surf.astype(f32).reshape(B, 1)
    y_mant = y_mant.astype(f32).reshape(B, 1)
    dy_surf_gain = dy_surf_gain.astype(f32).reshape(B, 1)
    dy_surf_loss = dy_surf_loss.astype(f32).reshape(B, 1)

    # TODO(synk): the species gather k_swap_mant[:, inds_r] is done in the XLA
    # wrapper (static per-module indices); an in-kernel DMA gather is not
    # worthwhile at these sizes.
    rh_m2s = jnp.take(rate_hopping, inds_r_m2s, axis=1)           # (B, N)

    # Pad to TPU-friendly shapes: batch -> multiple of 8 (f32 sublanes),
    # species / reactions -> multiples of 128 (lanes).
    B_pad = _round_up(B, 8)
    S_pad = _round_up(S, 128)
    tile = min(int(tile_n), _round_up(N, 128))                    # multiple of 128
    N_pad = _round_up(N, tile)
    n_tiles = N_pad // tile

    def pad2(x, rows, cols, fill=0.0):
        return jnp.pad(x, ((0, rows - x.shape[0]), (0, cols - x.shape[1])),
                       constant_values=fill)

    rh_m2s_p = pad2(rh_m2s, B_pad, N_pad)
    rh_p = pad2(rate_hopping, B_pad, S_pad)
    y_in_p = pad2(y_in, B_pad, S_pad)
    mask_p = pad2(mask, 1, S_pad)
    y_surf_p = pad2(y_surf, B_pad, 1, fill=1.0)   # keep padded rows finite
    y_mant_p = pad2(y_mant, B_pad, 1, fill=1.0)
    gain_p = pad2(dy_surf_gain, B_pad, 1)
    loss_p = pad2(dy_surf_loss, B_pad, 1)

    reac_spec = pl.BlockSpec((B_pad, tile), lambda j: (0, j))
    species_spec = pl.BlockSpec((B_pad, S_pad), lambda j: (0, 0))
    mask_spec = pl.BlockSpec((1, S_pad), lambda j: (0, 0))
    col_spec = pl.BlockSpec((B_pad, 1), lambda j: (0, 0))

    kernel = functools.partial(_smt_kernel,
                               layer_factor=float(layer_factor),
                               alpha_gain=alpha_gain)

    m2s, s2m = pl.pallas_call(
        kernel,
        out_shape=(jax.ShapeDtypeStruct((B_pad, N_pad), f32),
                   jax.ShapeDtypeStruct((B_pad, N_pad), f32)),
        grid=(n_tiles,),
        in_specs=[reac_spec, species_spec, species_spec, mask_spec,
                  col_spec, col_spec, col_spec, col_spec],
        out_specs=(reac_spec, reac_spec),
        compiler_params=pltpu.CompilerParams(
            dimension_semantics=("parallel",)),
    )(rh_m2s_p, rh_p, y_in_p, mask_p, y_surf_p, y_mant_p, gain_p, loss_p)

    # torch.concat([rates_m2s, rates_s2m.repeat(1, N)], dim=-1)
    return jnp.concatenate([m2s[:B, :N], s2m[:B, :N]], axis=-1)


def _reference(rate_hopping, y_in, inds_mant, y_surf, y_mant,
               dy_surf_gain, dy_surf_loss, inds_r_m2s,
               *, layer_factor, num_active_layers):
    """Pure-JAX reference mirroring the PyTorch forward exactly."""
    alpha_gain = layer_factor / num_active_layers
    n_layer_mant = y_mant * layer_factor
    k_swap_mant = rate_hopping / jnp.maximum(n_layer_mant, 1.0)       # clamp_min
    rates_m2s = (k_swap_mant[:, inds_r_m2s]
                 + dy_surf_loss / jnp.maximum(y_surf, y_mant))
    k_swap_surf = k_swap_mant * y_in * inds_mant.astype(y_in.dtype) / y_surf
    k_swap_surf = jnp.sum(k_swap_surf, axis=-1, keepdims=True)
    rates_s2m = dy_surf_gain * alpha_gain + k_swap_surf
    rates_s2m = jnp.tile(rates_s2m, (1, rates_m2s.shape[1]))
    return jnp.concatenate([rates_m2s, rates_s2m], axis=-1)


if __name__ == "__main__":
    key = jax.random.PRNGKey(0)
    ks = jax.random.split(key, 8)

    B = 8            # batch of medium conditions
    S = 200          # species in the network
    N = 160          # mantle<->surface transition reactions
    layer_factor = 4.0
    num_active_layers = 2.0

    rate_hopping = jax.random.uniform(ks[0], (B, S), minval=1e-3, maxval=10.0)
    y_in = jax.random.uniform(ks[1], (B, S), minval=1e-10, maxval=1e-2)
    inds_mant = (jax.random.uniform(ks[2], (S,)) < 0.5).astype(jnp.int32)  # mantle-species mask
    y_surf = jax.random.uniform(ks[3], (B, 1), minval=1e-3, maxval=1.0)
    y_mant = jax.random.uniform(ks[4], (B, 1), minval=1e-3, maxval=5.0)
    dy_surf_gain = jax.random.uniform(ks[5], (B, 1), minval=0.0, maxval=1.0)
    dy_surf_loss = jax.random.uniform(ks[6], (B, 1), minval=0.0, maxval=1.0)
    inds_r_m2s = jax.random.randint(ks[7], (N,), 0, S)

    out = surface_mantle_transition(
        rate_hopping, y_in, inds_mant, y_surf, y_mant,
        dy_surf_gain, dy_surf_loss, inds_r_m2s,
        layer_factor=layer_factor, num_active_layers=num_active_layers)
    out = jax.block_until_ready(out)

    ref = _reference(
        rate_hopping.astype(jnp.float32), y_in.astype(jnp.float32), inds_mant,
        y_surf.astype(jnp.float32), y_mant.astype(jnp.float32),
        dy_surf_gain.astype(jnp.float32), dy_surf_loss.astype(jnp.float32),
        inds_r_m2s, layer_factor=layer_factor,
        num_active_layers=num_active_layers)

    assert out.shape == (B, 2 * N) and out.dtype == jnp.float32
    np.testing.assert_allclose(np.asarray(out), np.asarray(ref),
                               rtol=1e-5, atol=1e-6)

    # Also exercise a multi-tile "parallel" grid (2 reaction tiles).
    out2 = surface_mantle_transition(
        rate_hopping, y_in, inds_mant, y_surf, y_mant,
        dy_surf_gain, dy_surf_loss, inds_r_m2s,
        layer_factor=layer_factor, num_active_layers=num_active_layers,
        tile_n=128)
    out2 = jax.block_until_ready(out2)
    np.testing.assert_allclose(np.asarray(out2), np.asarray(ref),
                               rtol=1e-5, atol=1e-6)

    print("KERNEL_OK")
</pallas_src>

<mosaic_0001>
module attributes {stable_mosaic.version = 11 : i64} {
  func.func @_smt_kernel(%arg0: i32, %arg1: memref<8x256xf32, #tpu.memory_space<vmem>>, %arg2: memref<8x256xf32, #tpu.memory_space<vmem>>, %arg3: memref<8x256xf32, #tpu.memory_space<vmem>>, %arg4: memref<1x256xf32, #tpu.memory_space<vmem>>, %arg5: memref<8x1xf32, #tpu.memory_space<vmem>>, %arg6: memref<8x1xf32, #tpu.memory_space<vmem>>, %arg7: memref<8x1xf32, #tpu.memory_space<vmem>>, %arg8: memref<8x1xf32, #tpu.memory_space<vmem>>, %arg9: memref<8x256xf32, #tpu.memory_space<vmem>>, %arg10: memref<8x256xf32, #tpu.memory_space<vmem>>) attributes {dimension_semantics = [#tpu.dimension_semantics<parallel>], iteration_bounds = array<i64: 1>, scalar_prefetch = 0 : i64, scratch_operands = 0 : i64, tpu.core_type = #tpu.core_type<tc>, window_params = [{transform_indices = @transform_0, window_bounds = array<i64: 8, 256>}, {pipeline_mode = #tpu.pipeline_mode<synchronous>, transform_indices = @transform_1, window_bounds = array<i64: 8, 256>}, {pipeline_mode = #tpu.pipeline_mode<synchronous>, transform_indices = @transform_2, window_bounds = array<i64: 8, 256>}, {pipeline_mode = #tpu.pipeline_mode<synchronous>, transform_indices = @transform_3, window_bounds = array<i64: 1, 256>}, {pipeline_mode = #tpu.pipeline_mode<synchronous>, transform_indices = @transform_4, window_bounds = array<i64: 8, 1>}, {pipeline_mode = #tpu.pipeline_mode<synchronous>, transform_indices = @transform_5, window_bounds = array<i64: 8, 1>}, {pipeline_mode = #tpu.pipeline_mode<synchronous>, transform_indices = @transform_6, window_bounds = array<i64: 8, 1>}, {pipeline_mode = #tpu.pipeline_mode<synchronous>, transform_indices = @transform_7, window_bounds = array<i64: 8, 1>}, {transform_indices = @transform_8, window_bounds = array<i64: 8, 256>}, {transform_indices = @transform_9, window_bounds = array<i64: 8, 256>}]} {
    %c0 = arith.constant 0 : index
    %c0_0 = arith.constant 0 : index
    %0 = vector.load %arg5[%c0, %c0_0] : memref<8x1xf32, #tpu.memory_space<vmem>>, vector<8x1xf32>
    %c0_1 = arith.constant 0 : index
    %c0_2 = arith.constant 0 : index
    %1 = vector.load %arg6[%c0_1, %c0_2] : memref<8x1xf32, #tpu.memory_space<vmem>>, vector<8x1xf32>
    %cst = arith.constant 4.000000e+00 : f32
    %2 = vector.broadcast %cst : f32 to vector<8x1xf32>
    %3 = arith.mulf %1, %2 : vector<8x1xf32>
    %cst_3 = arith.constant 1.000000e+00 : f32
    %4 = vector.broadcast %cst_3 : f32 to vector<8x1xf32>
    %5 = arith.maximumf %3, %4 : vector<8x1xf32>
    %cst_4 = arith.constant 1.000000e+00 : f32
    %6 = vector.broadcast %cst_4 : f32 to vector<8x1xf32>
    %7 = arith.divf %6, %5 : vector<8x1xf32>
    %c0_5 = arith.constant 0 : index
    %c0_6 = arith.constant 0 : index
    %8 = vector.load %arg8[%c0_5, %c0_6] : memref<8x1xf32, #tpu.memory_space<vmem>>, vector<8x1xf32>
    %9 = arith.maximumf %0, %1 : vector<8x1xf32>
    %10 = arith.divf %8, %9 : vector<8x1xf32>
    %c0_7 = arith.constant 0 : index
    %c0_8 = arith.constant 0 : index
    %11 = vector.load %arg2[%c0_7, %c0_8] : memref<8x256xf32, #tpu.memory_space<vmem>>, vector<8x256xf32>
    %c0_9 = arith.constant 0 : index
    %c0_10 = arith.constant 0 : index
    %12 = vector.load %arg3[%c0_9, %c0_10] : memref<8x256xf32, #tpu.memory_space<vmem>>, vector<8x256xf32>
    %13 = arith.mulf %11, %12 : vector<8x256xf32>
    %c0_11 = arith.constant 0 : index
    %c0_12 = arith.constant 0 : index
    %14 = vector.load %arg4[%c0_11, %c0_12] : memref<1x256xf32, #tpu.memory_space<vmem>>, vector<1x256xf32>
    %15 = vector.broadcast %14 : vector<1x256xf32> to vector<8x256xf32>
    %16 = arith.mulf %13, %15 : vector<8x256xf32>
    %cst_13 = arith.constant dense<0.000000e+00> : vector<8xf32>
    %17 = vector.multi_reduction <add>, %16, %cst_13 [1] : vector<8x256xf32> to vector<8xf32>
    %18 = vector.shape_cast %17 : vector<8xf32> to vector<8x1xf32>
    %19 = arith.mulf %18, %7 : vector<8x1xf32>
    %20 = arith.divf %19, %0 : vector<8x1xf32>
    %c0_14 = arith.constant 0 : index
    %c0_15 = arith.constant 0 : index
    %21 = vector.load %arg7[%c0_14, %c0_15] : memref<8x1xf32, #tpu.memory_space<vmem>>, vector<8x1xf32>
    %cst_16 = arith.constant 2.000000e+00 : f32
    %22 = vector.broadcast %cst_16 : f32 to vector<8x1xf32>
    %23 = arith.mulf %21, %22 : vector<8x1xf32>
    %24 = arith.addf %23, %20 : vector<8x1xf32>
    %c0_17 = arith.constant 0 : index
    %c0_18 = arith.constant 0 : index
    %25 = vector.load %arg1[%c0_17, %c0_18] : memref<8x256xf32, #tpu.memory_space<vmem>>, vector<8x256xf32>
    %26 = vector.broadcast %7 : vector<8x1xf32> to vector<8x256xf32>
    %27 = arith.mulf %25, %26 : vector<8x256xf32>
    %28 = vector.broadcast %10 : vector<8x1xf32> to vector<8x256xf32>
    %29 = arith.addf %27, %28 : vector<8x256xf32>
    %c0_19 = arith.constant 0 : index
    %c0_20 = arith.constant 0 : index
    %30 = vector.load %arg9[%c0_19, %c0_20] : memref<8x256xf32, #tpu.memory_space<vmem>>, vector<8x256xf32>
    tpu.vector_store %arg9[%c0_19, %c0_20], %29 {strides = array<i32>} : memref<8x256xf32, #tpu.memory_space<vmem>>, vector<8x256xf32>,
    %31 = vector.shape_cast %24 : vector<8x1xf32> to vector<8x1xf32>
    %32 = vector.broadcast %31 : vector<8x1xf32> to vector<8x256xf32>
    %c0_21 = arith.constant 0 : index
    %c0_22 = arith.constant 0 : index
    %33 = vector.load %arg10[%c0_21, %c0_22] : memref<8x256xf32, #tpu.memory_space<vmem>>, vector<8x256xf32>
    tpu.vector_store %arg10[%c0_21, %c0_22], %32 {strides = array<i32>} : memref<8x256xf32, #tpu.memory_space<vmem>>, vector<8x256xf32>,
    return
  }
  func.func @transform_0(%arg0: i32) -> (i32, i32) {
    %c0_i32 = arith.constant 0 : i32
    %c0_i32_0 = arith.constant 0 : i32
    return %c0_i32, %arg0 : i32, i32
  }
  func.func @transform_1(%arg0: i32) -> (i32, i32) {
    %c0_i32 = arith.constant 0 : i32
    %c0_i32_0 = arith.constant 0 : i32
    %c0_i32_1 = arith.constant 0 : i32
    return %c0_i32, %c0_i32_0 : i32, i32
  }
  func.func @transform_2(%arg0: i32) -> (i32, i32) {
    %c0_i32 = arith.constant 0 : i32
    %c0_i32_0 = arith.constant 0 : i32
    %c0_i32_1 = arith.constant 0 : i32
    return %c0_i32, %c0_i32_0 : i32, i32
  }
  func.func @transform_3(%arg0: i32) -> (i32, i32) {
    %c0_i32 = arith.constant 0 : i32
    %c0_i32_0 = arith.constant 0 : i32
    %c0_i32_1 = arith.constant 0 : i32
    return %c0_i32, %c0_i32_0 : i32, i32
  }
  func.func @transform_4(%arg0: i32) -> (i32, i32) {
    %c0_i32 = arith.constant 0 : i32
    %c0_i32_0 = arith.constant 0 : i32
    %c0_i32_1 = arith.constant 0 : i32
    return %c0_i32, %c0_i32_0 : i32, i32
  }
  func.func @transform_5(%arg0: i32) -> (i32, i32) {
    %c0_i32 = arith.constant 0 : i32
    %c0_i32_0 = arith.constant 0 : i32
    %c0_i32_1 = arith.constant 0 : i32
    return %c0_i32, %c0_i32_0 : i32, i32
  }
  func.func @transform_6(%arg0: i32) -> (i32, i32) {
    %c0_i32 = arith.constant 0 : i32
    %c0_i32_0 = arith.constant 0 : i32
    %c0_i32_1 = arith.constant 0 : i32
    return %c0_i32, %c0_i32_0 : i32, i32
  }
  func.func @transform_7(%arg0: i32) -> (i32, i32) {
    %c0_i32 = arith.constant 0 : i32
    %c0_i32_0 = arith.constant 0 : i32
    %c0_i32_1 = arith.constant 0 : i32
    return %c0_i32, %c0_i32_0 : i32, i32
  }
  func.func @transform_8(%arg0: i32) -> (i32, i32) {
    %c0_i32 = arith.constant 0 : i32
    %c0_i32_0 = arith.constant 0 : i32
    return %c0_i32, %arg0 : i32, i32
  }
  func.func @transform_9(%arg0: i32) -> (i32, i32) {
    %c0_i32 = arith.constant 0 : i32
    %c0_i32_0 = arith.constant 0 : i32
    return %c0_i32, %arg0 : i32, i32
  }
}

</mosaic_0001>

<bundles_post_ra>
// kernel: tpu_custom_call.1
= control target key start
LH: loop header
LB: loop body
LE: loop exit
PB: predicated region body
PF: predicated region fallthrough
CT: control target
= control target key end

     0   :  { %15 = vsyncpa [#allocation3], 0  ;;  %s400_s0 = inlined_call_operand.vmem [shape: f32[8,256], index: 0, kind: input, shape index: {}]   ;;  %s401_s1 = inlined_call_operand.vmem [shape: f32[8,256], index: 1, kind: input, shape index: {}]   ;;  %s402_s2 = inlined_call_operand.hbm [shape: f32[8,256], index: 2, kind: input, shape index: {}]   ;;  %s403_s3 = inlined_call_operand.hbm [shape: f32[1,256], index: 3, kind: input, shape index: {}]   ;;  %s404_s4 = inlined_call_operand.vmem [shape: f32[8,1], index: 4, kind: input, shape index: {}]   ;;  %s405_s5 = inlined_call_operand.vmem [shape: f32[8,1], index: 5, kind: input, shape index: {}]   ;;  %s406_s6 = inlined_call_operand.vmem [shape: f32[8,1], index: 6, kind: input, shape index: {}]   ;;  %s407_s7 = inlined_call_operand.vmem [shape: f32[8,1], index: 7, kind: input, shape index: {}]   ;;  %s408_s8 = inlined_call_operand.hbm [shape: f32[8,256], index: 8, kind: output, shape index: {0}]   ;;  %s409_s9 = inlined_call_operand.hbm [shape: f32[8,256], index: 9, kind: output, shape index: {1}]  }
   0x1   :  { %16 = vsyncpa [#allocation6], 0 }
   0x2   :  { %17 = vsyncpa [#allocation4], 0 }
   0x3   :  { %18 = vsyncpa [#allocation9], 0  ;;  %s28_s11 = sshll.u32 %s402_s2, 4  ;;  %s309_s12 = smov [#allocation2]   ;;  %s29_s11 = int_to_ptr.hbm [resolvable:$true] %s28_s11 }
   0x4   :  { %s30_s13 = sshll.u32 %s309_s12, 4  ;;  %s39_s16 = sshll.u32 %s403_s3, 4  ;;  %s31_s13 = int_to_ptr.vmem [resolvable:$true] %s30_s13  ;;  %s40_s16 = int_to_ptr.hbm [resolvable:$true] %s39_s16 }
   0x5   :  { %33 = dma.hbm_to_vmem [thread:$0]  %s29_s11, 256, %s31_s13, [#allocation3]  }
   0x6   :  { %s310_s17 = smov [#allocation5]  }
   0x7   :  { %s41_s18 = sshll.u32 %s310_s17, 4  ;;  %s42_s18 = int_to_ptr.vmem [resolvable:$true] %s41_s18 }
   0x8   :  { %44 = dma.hbm_to_vmem [thread:$0]  %s40_s16, 32, %s42_s18, [#allocation6]  }
   0x9   :  { %301 = dma.done.wait [#allocation3], 256  }
   0xa   :  { %302 = vsyncadd [#allocation3], 4294967040 }
   0xb   :  { %303 = dma.done.wait [#allocation6], 32  }
   0xc   :  { %304 = vsyncadd [#allocation6], 4294967264  ;;  %v311_v0 = vmov 0   ;;  %v97_v1 = vld [vmem:[%s401_s1] sm:$0xff]  ;;  %v98_v2 = vld [vmem:[%s401_s1 + $0x8] sm:$0xff]  ;;  %s165_s11 = sshll.u32 %s408_s8, 4  ;;  %s166_s11 = int_to_ptr.hbm [resolvable:$true] %s165_s11 }
   0xd   :  { %197 = vset.pattern.permute.xlu0 %v311_v0  ;;  %198 = vset.pattern.permute.xlu1 %v311_v0  ;;  %v99_v3 = vld [vmem:[#allocation2] sm:$0xff]  ;;  %v100_v4 = vld [vmem:[#allocation2 + $0x8] sm:$0xff]  ;;  %v103_v6 = vld [vmem:[#allocation5] sm:$0x3]  ;;  %s313_s12 = smov [#allocation8]   ;;  %s176_s15 = sshll.u32 %s409_s9, 4  ;;  %s177_s15 = int_to_ptr.hbm [resolvable:$true] %s176_s15 }
   0xe   :  { %v101_v5 = vmul.f32 %v99_v3, %v97_v1  ;;  %v62_v7 = vld [vmem:[%s405_s5] sm:$0xff]  ;;  %v102_v8 = vmul.f32 %v100_v4, %v98_v2  ;;  %v105_v9 = vperm.slane %v103_v6, 0  ;;  %v106_v10 = vperm.slane %v103_v6, 1  ;;  %v134_v57 = vld [vmem:[%s400_s0 + $0x8] sm:$0xff]  ;;  %s174_s13 = sshll.u32 %s313_s12, 4  ;;  %s175_s13 = int_to_ptr.vmem [resolvable:$true] %s174_s13 }
   0xf   :  { %v63_v11 = vmul.f32 4.0, %v62_v7  ;;  %v61_v12 = vld [vmem:[%s404_s4] sm:$0xff] }
  0x10   :  { %v81_v13 = vmax.f32 %v61_v12, %v62_v7  ;;  %v109_v14 = vmul.f32 %v105_v9, %v101_v5  ;;  %v110_v15 = vmul.f32 %v106_v10, %v102_v8  ;;  %v80_v33 = vld [vmem:[%s407_s7] sm:$0xff]  ;;  %vm120_vm8 = vweird.f32 %v61_v12 }
  0x11   :  { %v64_v16 = vmax.f32 %v63_v11, 1.0  ;;  %v126_v44 = vand.u32 2147483648, %v61_v12  ;;  %v124_v46 = vand.u32 2147483647, %v61_v12  ;;  %v130_v49 = vld [vmem:[%s406_s6] sm:$0xff]  ;;  %s312_s6 = smov [#allocation7]  }
  0x12   :  { %199 = vrcp.f32 %v81_v13  ;;  %v111_v17 = vadd.f32 %v110_v15, %v109_v14  ;;  %v93_v22 = vand.u32 2147483648, %v81_v13  ;;  %vm87_vm0 = vweird.f32 %v81_v13  ;;  %v133_v56 = vld [vmem:[%s400_s0] sm:$0xff]  ;;  %s163_s29 = sshll.u32 %s312_s6, 4  ;;  %s164_s29 = int_to_ptr.vmem [resolvable:$true] %s163_s29 }
  0x13   :  { %201 = vrcp.f32 %v64_v16  ;;  %v91_v24 = vand.u32 2147483647, %v81_v13  ;;  %vm70_vm2 = vweird.f32 %v64_v16  ;;  %v76_v28 = vand.u32 2147483648, %v64_v16 }
  0x14   :  { %112 = vadd.xlane.f32.xlu0 %v111_v17  ;;  %v94_v29 = vor.u32 1.1754944e-38, %v93_v22  ;;  %v74_v30 = vand.u32 2147483647, %v64_v16  ;;  %203 = vrcp.f32 %v61_v12  ;;  %v127_v47 = vor.u32 1.1754944e-38, %v126_v44 }
  0x15   :  { %vm92_vm5 = vcmp.eq.f32.partialorder %v91_v24, 8.507059e+37  ;;  %v77_v35 = vor.u32 1.1754944e-38, %v76_v28  ;;  %vm125_vm11 = vcmp.eq.f32.partialorder %v124_v46, 8.507059e+37  ;;  %v131_v53 = vmul.f32 2.0, %v130_v49 }
  0x16   :  { %vm75_vm7 = vcmp.eq.f32.partialorder %v74_v30, 8.507059e+37 }
  0x18   :  { %v200_v18 = vpop.eup %199 }
  0x19   :  { %v202_v19 = vpop.eup %201  ;;  %v83_v20 = vmul.f32 %v200_v18, %v81_v13  ;;  %vm88_vm1 = vweird.f32 %v200_v18 }
  0x1a   :  { %v66_v21 = vmul.f32 %v202_v19, %v64_v16  ;;  %vm71_vm3 = vweird.f32 %v202_v19  ;;  %vm89_vm4 = vmor %vm87_vm0, %vm88_vm1  ;;  %v204_v40 = vpop.eup %203 }
  0x1b   :  { %v84_v23 = vsub.f32 1.0, %v83_v20  ;;  %vm72_vm6 = vmor %vm70_vm2, %vm71_vm3  ;;  %v116_v41 = vmul.f32 %v204_v40, %v61_v12  ;;  %vm121_vm9 = vweird.f32 %v204_v40 }
  0x1c   :  { %v67_v25 = vsub.f32 1.0, %v66_v21  ;;  %vm122_vm10 = vmor %vm120_vm8, %vm121_vm9 }
  0x1d   :  { %v85_v26 = vmul.f32 %v200_v18, %v84_v23  ;;  %v117_v42 = vsub.f32 1.0, %v116_v41 }
  0x1e   :  { %v68_v27 = vmul.f32 %v202_v19, %v67_v25 }
  0x1f   :  { %v86_v31 = vadd.f32 %v200_v18, %v85_v26  ;;  %v118_v43 = vmul.f32 %v204_v40, %v117_v42 }
  0x20   :  { %v69_v32 = vadd.f32 %v202_v19, %v68_v27 }
  0x21   :  { %v90_v34 = vsel %vm89_vm4, %v200_v18, %v86_v31  ;;  %v119_v45 = vadd.f32 %v204_v40, %v118_v43 }
  0x22   :  { %v95_v36 = vsel %vm92_vm5, %v94_v29, %v90_v34  ;;  %v73_v37 = vsel %vm72_vm6, %v202_v19, %v69_v32 }
  0x23   :  { %v96_v38 = vmul.f32 %v95_v36, %v80_v33  ;;  %v78_v39 = vsel %vm75_vm7, %v77_v35, %v73_v37  ;;  %v123_v48 = vsel %vm122_vm10, %v204_v40, %v119_v45 }
  0x24   :  { %v128_v51 = vsel %vm125_vm11, %v127_v47, %v123_v48 }
  0x25   :  { %144 = vperm.xlu1 %198, %v96_v38  }
  0x28   :  { %137 = vperm.xlu0 %197, %v78_v39  }
  0x87   :  { %v113_v50 = vpop.xlane.xlu0 %112 }
  0x88   :  { %v114_v52 = vmul.f32 %v113_v50, %v78_v39 }
  0x8a   :  { %v129_v54 = vmul.f32 %v128_v51, %v114_v52 }
  0x8c   :  { %v132_v55 = vadd.f32 %v131_v53, %v129_v54 }
  0x8e   :  { %153 = vperm.xlu1 %198, %v132_v55  }
  0x97   :  { %v145_v59 = vpop.permute.xlu1 %144 }
  0x9a   :  { %v138_v58 = vpop.permute.xlu0 %137 }
  0x9b   :  { %v140_v60 = vmul.f32 %v138_v58, %v133_v56  ;;  %v141_v61 = vmul.f32 %v138_v58, %v134_v57 }
  0x9d   :  { %v147_v62 = vadd.f32 %v145_v59, %v140_v60  ;;  %v148_v63 = vadd.f32 %v145_v59, %v141_v61 }
  0x9f   :  { %149 = vst [vmem:[#allocation7] sm:$0xff] %v147_v62 }
  0xa0   :  { %150 = vst [vmem:[#allocation7 + $0x8] sm:$0xff] %v148_v63 }
  0xa1   :  { %168 = dma.vmem_to_hbm [thread:$0]  %s164_s29, 256, %s166_s11, [#allocation4]  }
 0x100   :  { %v154_v0 = vpop.permute.xlu1 %153 }
 0x101   :  { %156 = vst [vmem:[#allocation8] sm:$0xff] %v154_v0 }
 0x102   :  { %157 = vst [vmem:[#allocation8 + $0x8] sm:$0xff] %v154_v0 }
 0x103   :  { %179 = dma.vmem_to_hbm [thread:$0]  %s175_s13, 256, %s177_s15, [#allocation9]  }
 0x104   :  { %305 = dma.done.wait [#allocation4], 256  }
 0x105   :  { %306 = vsyncadd [#allocation4], 4294967040 }
 0x106   :  { %307 = dma.done.wait [#allocation9], 256  }
 0x107   :  { %308 = vsyncadd [#allocation9], 4294967040 }
 0x108   :  { %188 = vsyncpa [#allocation3], 1 }
 0x109   :  { %189 = vsyncpa [#allocation6], 1 }
 0x10a   :  { %190 = vsyncpa [#allocation4], 1 }
 0x10b   :  { %191 = vsyncpa [#allocation9], 1 }

</bundles_post_ra>
